<compile_context>
chip_gen: v7x
topology: tpu7x:2x2x1
jax: 0.10.0
libtpu: 0.0.40
codegen_flags: <defaults>
</compile_context>

<pallas_src>
import jax
import jax.numpy as jnp
from jax.experimental import pallas as pl
from jax.experimental.pallas import tpu as pltpu


OUT_DIM = 4           # [pitch, duration, energy, stress]
MAX_TILE_ROWS = 4096  # per-grid-step row cap (keeps live VMEM well under the scoped limit)


# --------------------------------------------------------------------------- #
# Kernel
# --------------------------------------------------------------------------- #
def _make_prosody_kernel(relu_width):
    """Build the fused forward kernel.

    relu_width = 3*H: number of leading fused-hidden lanes that receive ReLU.
    The trailing D lanes are the identity pass-through of x (used by the
    stress head) and must stay linear.
    """

    def kernel(x_ref, w1_ref, b1_ref, w2_ref, b2_ref, o_ref):
        x = x_ref[...]                                            # (tile_n, D)

        # First layer of all three MLP heads + identity pass-through of x,
        # in a single MXU pass: (tile_n, D) @ (D, 3H + D).
        h = jnp.dot(x, w1_ref[...], preferred_element_type=jnp.float32) + b1_ref[...]
        hcol = jax.lax.broadcasted_iota(jnp.int32, h.shape, dimension=1)
        h = jnp.where(hcol < relu_width, jnp.maximum(h, 0.0), h)

        # Second layer + stress head + concat as one narrow matmul:
        # (tile_n, 3H+D) @ (3H+D, 4).  prosody_control is folded into w2/b2.
        raw = jnp.dot(h, w2_ref[...], preferred_element_type=jnp.float32) + b2_ref[...]

        # Sigmoid only on the stress column (column 3) of the 4-wide result.
        ocol = jax.lax.broadcasted_iota(jnp.int32, raw.shape, dimension=1)
        o_ref[...] = jnp.where(ocol == OUT_DIM - 1, jax.nn.sigmoid(raw), raw)

    return kernel


# --------------------------------------------------------------------------- #
# Parameter fusion (hoist out of the per-call hot path; cache per control set)
# --------------------------------------------------------------------------- #
def fuse_prosody_params(params, prosody_control=None):
    D = params["w1_pitch"].shape[0]
    H = params["w1_pitch"].shape[1]

    c_pitch = float(prosody_control.get("pitch", 1.0)) if prosody_control else 1.0
    c_speed = float(prosody_control.get("speed", 1.0)) if prosody_control else 1.0
    c_energy = float(prosody_control.get("energy", 1.0)) if prosody_control else 1.0

    K1 = 3 * H + D  # fused hidden width (= 128 for D = H = 32)

    # First layer: [pitch | dur | energy | identity-passthrough-of-x]
    w1 = jnp.concatenate(
        [params["w1_pitch"], params["w1_dur"], params["w1_en"],
         jnp.eye(D, dtype=jnp.float32)], axis=1)                  # (D, 3H + D)
    b1 = jnp.concatenate(
        [params["b1_pitch"], params["b1_dur"], params["b1_en"],
         jnp.zeros((1, D), jnp.float32)], axis=1)                 # (1, 3H + D)

    # Second layer: block-diagonal over the fused hidden, control folded in.
    # Stress weights act on the identity pass-through lanes (rows 3H..K1-1).
    w2 = jnp.zeros((K1, OUT_DIM), jnp.float32)
    w2 = w2.at[0:H, 0].set(params["w2_pitch"][:, 0] * c_pitch)
    w2 = w2.at[H:2 * H, 1].set(params["w2_dur"][:, 0] * c_speed)
    w2 = w2.at[2 * H:3 * H, 2].set(params["w2_en"][:, 0] * c_energy)
    w2 = w2.at[3 * H:K1, 3].set(params["w_stress"][:, 0])

    b2 = jnp.concatenate(
        [params["b2_pitch"] * c_pitch, params["b2_dur"] * c_speed,
         params["b2_en"] * c_energy, params["b_stress"]], axis=1)  # (1, 4)

    return {"w1": w1, "b1": b1, "w2": w2, "b2": b2,
            "in_dim": D, "relu_width": 3 * H}


# --------------------------------------------------------------------------- #
# Row tiling
# --------------------------------------------------------------------------- #
def _tile_rows(n):
    """Pick (tile_n, n_pad): tiles sized to the actual row count, rounded to 8."""
    n = max(int(n), 1)
    num_tiles = -(-n // MAX_TILE_ROWS)               # ceil
    tile = -(-n // num_tiles)                        # ceil(n / num_tiles)
    tile = max(8, ((tile + 7) // 8) * 8)             # sublane multiple
    return tile, tile * num_tiles


# --------------------------------------------------------------------------- #
# Forward
# --------------------------------------------------------------------------- #
def prosody_forward_fused(text_features, fused):
    """Forward pass using pre-fused parameters (call fuse_prosody_params once)."""
    B, T, D = text_features.shape
    assert D == fused["in_dim"]
    N = B * T
    x = text_features.reshape(N, D).astype(jnp.float32)

    tile_n, n_pad = _tile_rows(N)
    if n_pad != N:
        x = jnp.pad(x, ((0, n_pad - N), (0, 0)))
    grid = (n_pad // tile_n,)

    K1 = fused["w1"].shape[1]
    weight_bytes = 4 * (D * K1 + K1 + K1 * OUT_DIM + OUT_DIM)
    cost = pl.CostEstimate(
        flops=2 * n_pad * (D * K1 + K1 * OUT_DIM),
        transcendentals=n_pad,
        bytes_accessed=n_pad * (D + OUT_DIM) * 4 + weight_bytes,
    )

    kernel = _make_prosody_kernel(fused["relu_width"])

    out = pl.pallas_call(
        kernel,
        out_shape=jax.ShapeDtypeStruct((n_pad, OUT_DIM), jnp.float32),
        grid=grid,
        in_specs=[
            pl.BlockSpec((tile_n, D), lambda i: (i, 0)),       # x (row-tiled)
            pl.BlockSpec((D, K1), lambda i: (0, 0)),           # w1 (resident)
            pl.BlockSpec((1, K1), lambda i: (0, 0)),           # b1
            pl.BlockSpec((K1, OUT_DIM), lambda i: (0, 0)),     # w2
            pl.BlockSpec((1, OUT_DIM), lambda i: (0, 0)),      # b2
        ],
        out_specs=pl.BlockSpec((tile_n, OUT_DIM), lambda i: (i, 0)),
        compiler_params=pltpu.CompilerParams(
            dimension_semantics=("parallel",),
        ),
        cost_estimate=cost,
    )(x, fused["w1"], fused["b1"], fused["w2"], fused["b2"])

    return out[:N].reshape(B, T, OUT_DIM)


def prosody_predictor_forward(text_features, params, prosody_control=None):
    """Convenience wrapper mirroring ProsodyPredictor.forward (fuses per call).

    For repeated calls with the same (params, prosody_control), call
    fuse_prosody_params once and reuse prosody_forward_fused directly.
    """
    fused = fuse_prosody_params(params, prosody_control)
    return prosody_forward_fused(text_features, fused)


# --------------------------------------------------------------------------- #
# Synthetic params + pure-JAX reference
# --------------------------------------------------------------------------- #
def init_params(key, input_dim, hidden_dim):
    """Deterministic synthetic parameters (PyTorch-Linear-style uniform init)."""
    keys = jax.random.split(key, 14)

    def linear(kw, kb, fan_in, fan_out):
        bound = 1.0 / jnp.sqrt(float(fan_in))
        w = jax.random.uniform(kw, (fan_in, fan_out), jnp.float32, -bound, bound)
        b = jax.random.uniform(kb, (1, fan_out), jnp.float32, -bound, bound)
        return w, b

    p = {}
    p["w1_pitch"], p["b1_pitch"] = linear(keys[0], keys[1], input_dim, hidden_dim)
    p["w2_pitch"], p["b2_pitch"] = linear(keys[2], keys[3], hidden_dim, 1)
    p["w1_dur"],   p["b1_dur"]   = linear(keys[4], keys[5], input_dim, hidden_dim)
    p["w2_dur"],   p["b2_dur"]   = linear(keys[6], keys[7], hidden_dim, 1)
    p["w1_en"],    p["b1_en"]    = linear(keys[8], keys[9], input_dim, hidden_dim)
    p["w2_en"],    p["b2_en"]    = linear(keys[10], keys[11], hidden_dim, 1)
    p["w_stress"], p["b_stress"] = linear(keys[12], keys[13], input_dim, 1)
    return p


def reference_forward(text_features, params, prosody_control=None):
    """Pure-JAX reference mirroring the PyTorch module."""
    x = text_features.astype(jnp.float32)

    def head(w1, b1, w2, b2):
        return jnp.maximum(x @ w1 + b1, 0.0) @ w2 + b2

    pitch = head(params["w1_pitch"], params["b1_pitch"], params["w2_pitch"], params["b2_pitch"])
    duration = head(params["w1_dur"], params["b1_dur"], params["w2_dur"], params["b2_dur"])
    energy = head(params["w1_en"], params["b1_en"], params["w2_en"], params["b2_en"])
    stress = jax.nn.sigmoid(x @ params["w_stress"] + params["b_stress"])
    if prosody_control:
        pitch = pitch * prosody_control.get("pitch", 1.0)
        duration = duration * prosody_control.get("speed", 1.0)
        energy = energy * prosody_control.get("energy", 1.0)
    return jnp.concatenate([pitch, duration, energy, stress], axis=-1)


# --------------------------------------------------------------------------- #
# Self-test
# --------------------------------------------------------------------------- #
if __name__ == "__main__":
    config = {"text_encoder_dim": 32, "prosody_hidden_dim": 32}
    B, T, D = 2, 8, config["text_encoder_dim"]

    key = jax.random.PRNGKey(0)
    k_x, k_p = jax.random.split(key)
    text_features = jax.random.normal(k_x, (B, T, D), dtype=jnp.float32)
    params = init_params(k_p, config["text_encoder_dim"], config["prosody_hidden_dim"])

    prosody_control = {"pitch": 1.1, "speed": 0.9, "energy": 1.2}

    # Hoisted fusion: build the fused weights once, reuse across calls.
    fused = fuse_prosody_params(params, prosody_control)

    out = jax.block_until_ready(prosody_forward_fused(text_features, fused))
    ref = reference_forward(text_features, params, prosody_control)
    assert out.shape == (B, T, 4)
    assert jnp.allclose(out, ref, atol=1e-5, rtol=1e-5), "mismatch vs reference"

    # No-control path via the convenience wrapper.
    out2 = jax.block_until_ready(prosody_predictor_forward(text_features, params, None))
    ref2 = reference_forward(text_features, params, None)
    assert jnp.allclose(out2, ref2, atol=1e-5, rtol=1e-5), "mismatch (no control)"

    # Odd row count, single grid step (1200 rows <= MAX_TILE_ROWS).
    mid_x = jax.random.normal(jax.random.PRNGKey(1), (4, 300, D), dtype=jnp.float32)
    out3 = jax.block_until_ready(prosody_forward_fused(mid_x, fused))
    ref3 = reference_forward(mid_x, params, prosody_control)
    assert out3.shape == (4, 300, 4)
    assert jnp.allclose(out3, ref3, atol=1e-5, rtol=1e-5), "mismatch (single-tile)"

    # Large row count -> multi-step grid (exercises the parallel/megacore path).
    big_x = jax.random.normal(jax.random.PRNGKey(2), (8, 600, D), dtype=jnp.float32)
    out4 = jax.block_until_ready(prosody_forward_fused(big_x, fused))
    ref4 = reference_forward(big_x, params, prosody_control)
    assert out4.shape == (8, 600, 4)
    assert jnp.allclose(out4, ref4, atol=1e-5, rtol=1e-5), "mismatch (multi-tile)"

    print("KERNEL_OK")
</pallas_src>

<mosaic_0001>
module attributes {stable_mosaic.version = 11 : i64} {
  func.func @kernel(%arg0: i32, %arg1: memref<16x32xf32, #tpu.memory_space<vmem>>, %arg2: memref<32x128xf32, #tpu.memory_space<vmem>>, %arg3: memref<1x128xf32, #tpu.memory_space<vmem>>, %arg4: memref<128x4xf32, #tpu.memory_space<vmem>>, %arg5: memref<1x4xf32, #tpu.memory_space<vmem>>, %arg6: memref<16x4xf32, #tpu.memory_space<vmem>>) attributes {dimension_semantics = [#tpu.dimension_semantics<parallel>], iteration_bounds = array<i64: 1>, scalar_prefetch = 0 : i64, scratch_operands = 0 : i64, tpu.core_type = #tpu.core_type<tc>, window_params = [{transform_indices = @transform_0, window_bounds = array<i64: 16, 32>}, {pipeline_mode = #tpu.pipeline_mode<synchronous>, transform_indices = @transform_1, window_bounds = array<i64: 32, 128>}, {pipeline_mode = #tpu.pipeline_mode<synchronous>, transform_indices = @transform_2, window_bounds = array<i64: 1, 128>}, {pipeline_mode = #tpu.pipeline_mode<synchronous>, transform_indices = @transform_3, window_bounds = array<i64: 128, 4>}, {pipeline_mode = #tpu.pipeline_mode<synchronous>, transform_indices = @transform_4, window_bounds = array<i64: 1, 4>}, {transform_indices = @transform_5, window_bounds = array<i64: 16, 4>}]} {
    %c0 = arith.constant 0 : index
    %c0_0 = arith.constant 0 : index
    %0 = vector.load %arg1[%c0, %c0_0] : memref<16x32xf32, #tpu.memory_space<vmem>>, vector<16x32xf32>
    %c0_1 = arith.constant 0 : index
    %c0_2 = arith.constant 0 : index
    %1 = vector.load %arg2[%c0_1, %c0_2] : memref<32x128xf32, #tpu.memory_space<vmem>>, vector<32x128xf32>
    %cst = arith.constant dense<0.000000e+00> : vector<16x128xf32>
    %2 = tpu.matmul %0, %1, %cst {dimension_numbers = #tpu.dot_dimension_numbers<[1], [0], [0], [1], [0, 0, 1, 1], [], []>} : vector<16x32xf32>, vector<32x128xf32>, vector<16x128xf32> -> vector<16x128xf32>
    %c0_3 = arith.constant 0 : index
    %c0_4 = arith.constant 0 : index
    %3 = vector.load %arg3[%c0_3, %c0_4] : memref<1x128xf32, #tpu.memory_space<vmem>>, vector<1x128xf32>
    %4 = vector.broadcast %3 : vector<1x128xf32> to vector<16x128xf32>
    %5 = arith.addf %2, %4 : vector<16x128xf32>
    %6 = tpu.iota {dimensions = array<i32: 1>} : vector<16x128xi32>
    %c96_i32 = arith.constant 96 : i32
    %7 = vector.broadcast %c96_i32 : i32 to vector<16x128xi32>
    %8 = arith.cmpi slt, %6, %7 : vector<16x128xi32>
    %cst_5 = arith.constant 0.000000e+00 : f32
    %9 = vector.broadcast %cst_5 : f32 to vector<16x128xf32>
    %10 = arith.maximumf %5, %9 : vector<16x128xf32>
    %11 = arith.select %8, %10, %5 : vector<16x128xi1>, vector<16x128xf32>
    %c0_6 = arith.constant 0 : index
    %c0_7 = arith.constant 0 : index
    %12 = vector.load %arg4[%c0_6, %c0_7] : memref<128x4xf32, #tpu.memory_space<vmem>>, vector<128x4xf32>
    %cst_8 = arith.constant dense<0.000000e+00> : vector<16x4xf32>
    %13 = tpu.matmul %11, %12, %cst_8 {dimension_numbers = #tpu.dot_dimension_numbers<[1], [0], [0], [1], [0, 0, 1, 1], [], []>} : vector<16x128xf32>, vector<128x4xf32>, vector<16x4xf32> -> vector<16x4xf32>
    %c0_9 = arith.constant 0 : index
    %c0_10 = arith.constant 0 : index
    %14 = vector.load %arg5[%c0_9, %c0_10] : memref<1x4xf32, #tpu.memory_space<vmem>>, vector<1x4xf32>
    %15 = vector.broadcast %14 : vector<1x4xf32> to vector<16x4xf32>
    %16 = arith.addf %13, %15 : vector<16x4xf32>
    %17 = tpu.iota {dimensions = array<i32: 1>} : vector<16x4xi32>
    %c3_i32 = arith.constant 3 : i32
    %18 = vector.broadcast %c3_i32 : i32 to vector<16x4xi32>
    %19 = arith.cmpi eq, %17, %18 : vector<16x4xi32>
    %20 = arith.negf %16 : vector<16x4xf32>
    %21 = math.exp %20 : vector<16x4xf32>
    %cst_11 = arith.constant 1.000000e+00 : f32
    %22 = vector.broadcast %cst_11 : f32 to vector<16x4xf32>
    %23 = arith.addf %22, %21 : vector<16x4xf32>
    %24 = arith.divf %22, %23 : vector<16x4xf32>
    %25 = arith.select %19, %24, %16 : vector<16x4xi1>, vector<16x4xf32>
    %c0_12 = arith.constant 0 : index
    %c0_13 = arith.constant 0 : index
    %26 = vector.load %arg6[%c0_12, %c0_13] : memref<16x4xf32, #tpu.memory_space<vmem>>, vector<16x4xf32>
    tpu.vector_store %arg6[%c0_12, %c0_13], %25 {strides = array<i32>} : memref<16x4xf32, #tpu.memory_space<vmem>>, vector<16x4xf32>,
    return
  }
  func.func @transform_0(%arg0: i32) -> (i32, i32) {
    %c0_i32 = arith.constant 0 : i32
    %c0_i32_0 = arith.constant 0 : i32
    return %arg0, %c0_i32 : i32, i32
  }
  func.func @transform_1(%arg0: i32) -> (i32, i32) {
    %c0_i32 = arith.constant 0 : i32
    %c0_i32_0 = arith.constant 0 : i32
    %c0_i32_1 = arith.constant 0 : i32
    return %c0_i32, %c0_i32_0 : i32, i32
  }
  func.func @transform_2(%arg0: i32) -> (i32, i32) {
    %c0_i32 = arith.constant 0 : i32
    %c0_i32_0 = arith.constant 0 : i32
    %c0_i32_1 = arith.constant 0 : i32
    return %c0_i32, %c0_i32_0 : i32, i32
  }
  func.func @transform_3(%arg0: i32) -> (i32, i32) {
    %c0_i32 = arith.constant 0 : i32
    %c0_i32_0 = arith.constant 0 : i32
    %c0_i32_1 = arith.constant 0 : i32
    return %c0_i32, %c0_i32_0 : i32, i32
  }
  func.func @transform_4(%arg0: i32) -> (i32, i32) {
    %c0_i32 = arith.constant 0 : i32
    %c0_i32_0 = arith.constant 0 : i32
    %c0_i32_1 = arith.constant 0 : i32
    return %c0_i32, %c0_i32_0 : i32, i32
  }
  func.func @transform_5(%arg0: i32) -> (i32, i32) {
    %c0_i32 = arith.constant 0 : i32
    %c0_i32_0 = arith.constant 0 : i32
    return %arg0, %c0_i32 : i32, i32
  }
}

</mosaic_0001>

<bundles_post_ra>
// kernel: tpu_custom_call.1
= control target key start
LH: loop header
LB: loop body
LE: loop exit
PB: predicated region body
PF: predicated region fallthrough
CT: control target
= control target key end

     0   :  { %vm33_vm0 = vcmask 261120   ;;  %v115_v32 = vlaneseq  ;;  %vm235_vm3 = vcmask 31744   ;;  %s476_s1 = inlined_call_operand.vmem [shape: f32[32,128], index: 1, kind: input, shape index: {}]   ;;  %s477_s0 = inlined_call_operand.vmem [shape: f32[16,32], index: 0, kind: input, shape index: {}]   ;;  %s478_s3 = inlined_call_operand.vmem [shape: f32[128,4], index: 3, kind: input, shape index: {}]   ;;  %s479_s2 = inlined_call_operand.vmem [shape: f32[1,128], index: 2, kind: input, shape index: {}]   ;;  %s480_s4 = inlined_call_operand.vmem [shape: f32[1,4], index: 4, kind: input, shape index: {}]   ;;  %s481_s5 = inlined_call_operand.vmem [shape: f32[16,4], index: 5, kind: output, shape index: {}]  }
   0x1   :  { %v22_v0 = vld [vmem:[%s476_s1] sm:$0xff]  ;;  %v23_v1 = vld [vmem:[%s476_s1 + $0x8] sm:$0xff]  ;;  %v24_v2 = vld [vmem:[%s476_s1 + $0x10] sm:$0xff] }
   0x2   :  { %v318_v3 = vpack.c.bf16 %v23_v1, %v22_v0  ;;  %v25_v4 = vld [vmem:[%s476_s1 + $0x18] sm:$0xff]  ;;  %v20_v5 = vld [vmem:[%s477_s0] sm:$0xff]  ;;  %v123_v8 = vld [vmem:[%s478_s3 + $0x8] sm:$0xff]  ;;  %v116_v34 = vand.u32 127, %v115_v32 }
   0x3   :  { %v322_v6 = vpack.c.bf16 %v25_v4, %v24_v2  ;;  %280 = vmatprep.mubr.msk.f32.mxu0 %vm33_vm0, %v20_v5  ;;  %v122_v7 = vld [vmem:[%s478_s3] sm:$0xff]  ;;  %v124_v9 = vld [vmem:[%s478_s3 + $0x10] sm:$0xff]  ;;  %v125_v11 = vld [vmem:[%s478_s3 + $0x18] sm:$0xff] }
   0x4   :  { %319 = vmatprep.subr.bf16.mxu0 %v318_v3  ;;  %v326_v10 = vpack.c.bf16 %v123_v8, %v122_v7  ;;  %v330_v12 = vpack.c.bf16 %v125_v11, %v124_v9  ;;  %v126_v13 = vld [vmem:[%s478_s3 + $0x20] sm:$0xff]  ;;  %v127_v14 = vld [vmem:[%s478_s3 + $0x28] sm:$0xff]  ;;  %v128_v17 = vld [vmem:[%s478_s3 + $0x30] sm:$0xff]  ;;  %vm117_vm1 = vcmp.lt.s32.totalorder %v116_v34, 96  ;;  %vm220_vm2 = vcmp.eq.s32.totalorder %v116_v34, 3 }
   0x5   :  { %321 = vmatpush3.bf16.msra.mxu0 %v318_v3  ;;  %v334_v15 = vpack.c.bf16 %v127_v14, %v126_v13  ;;  %v21_v16 = vld [vmem:[%s477_s0 + $0x8] sm:$0xff]  ;;  %v129_v18 = vld [vmem:[%s478_s3 + $0x38] sm:$0xff]  ;;  %v130_v20 = vld [vmem:[%s478_s3 + $0x40] sm:$0xff] }
   0x6   :  { %323 = vmatprep.subr.bf16.mxu0 %v322_v6  ;;  %327 = vmatprep.subr.bf16.mxu1 %v326_v10  ;;  %v338_v19 = vpack.c.bf16 %v129_v18, %v128_v17  ;;  %v131_v21 = vld [vmem:[%s478_s3 + $0x48] sm:$0xff]  ;;  %v132_v23 = vld [vmem:[%s478_s3 + $0x50] sm:$0xff]  ;;  %v133_v24 = vld [vmem:[%s478_s3 + $0x58] sm:$0xff] }
   0x7   :  { %329 = vmatpush3.bf16.msra.mxu1 %v326_v10  ;;  %v342_v22 = vpack.c.bf16 %v131_v21, %v130_v20  ;;  %v346_v25 = vpack.c.bf16 %v133_v24, %v132_v23  ;;  %v134_v26 = vld [vmem:[%s478_s3 + $0x60] sm:$0xff]  ;;  %v135_v27 = vld [vmem:[%s478_s3 + $0x68] sm:$0xff]  ;;  %v136_v29 = vld [vmem:[%s478_s3 + $0x70] sm:$0xff] }
   0x8   :  { %331 = vmatprep.subr.bf16.mxu1 %v330_v12  ;;  %v350_v28 = vpack.c.bf16 %v135_v27, %v134_v26  ;;  %v137_v30 = vld [vmem:[%s478_s3 + $0x78] sm:$0xff]  ;;  %v242_v33 = vld [vmem:[%s479_s2] ss:$0 sm:$0xff] }
   0x9   :  { %325 = vmatpush3.bf16.msra.mxu0 %v322_v6  ;;  %v354_v31 = vpack.c.bf16 %v137_v30, %v136_v29  ;;  %v245_v43 = vld [vmem:[%s480_s4] ss:$0 sm:$0xff] }
   0xb   :  { %333 = vmatpush3.bf16.msra.mxu1 %v330_v12 }
   0xc   :  { %281 = vmatmul.mubr.msk.f32.vlgmr.msra.gmra.mrb[0].mxu0 %vm33_vm0, %v21_v16  ;;  %335 = vmatprep.subr.bf16.mxu1 %v334_v15 }
   0xf   :  { %337 = vmatpush3.bf16.msra.mxu1 %v334_v15 }
  0x10   :  { %339 = vmatprep.subr.bf16.mxu1 %v338_v19 }
  0x13   :  { %341 = vmatpush3.bf16.msra.mxu1 %v338_v19 }
  0x14   :  { %343 = vmatprep.subr.bf16.mxu1 %v342_v22 }
  0x17   :  { %345 = vmatpush3.bf16.msra.mxu1 %v342_v22 }
  0x18   :  { %347 = vmatprep.subr.bf16.mxu1 %v346_v25 }
  0x1b   :  { %349 = vmatpush3.bf16.msra.mxu1 %v346_v25 }
  0x1c   :  { %351 = vmatprep.subr.bf16.mxu1 %v350_v28 }
  0x1f   :  { %353 = vmatpush3.bf16.msra.mxu1 %v350_v28 }
  0x20   :  { %355 = vmatprep.subr.bf16.mxu1 %v354_v31 }
  0x23   :  { %357 = vmatpush3.bf16.msra.mxu1 %v354_v31 }
  0xdf   :  { %v282_v35 = vpop.f32.mrb[0].mxu0 }
  0xe0   :  { %v112_v36 = vadd.f32 %v282_v35, %v242_v33  ;;  %v106_v37 = vpop.f32.mrb[1].mxu0 }
  0xe1   :  { %v107_v38 = vadd.f32 %v242_v33, %v106_v37 }
  0xe2   :  { %v119_v39 = vmax.f32 %v112_v36, 0.0 }
  0xe3   :  { %v118_v40 = vmax.f32 %v107_v38, 0.0 }
  0xe4   :  { %v121_v42 = vsel %vm117_vm1, %v119_v39, %v112_v36 }
  0xe5   :  { %v120_v41 = vsel %vm117_vm1, %v118_v40, %v107_v38 }
  0xe6   :  { %315 = vmatprep.mubr.f32.mxu1 %v120_v41 }
  0xe7   :  { %316 = vmatmul.mubr.f32.vlgmr.msra.gmra.mrb[0].mxu1 %v121_v42 }
 0x1ba   :  { %v317_v44 = vpop.f32.mrb[0].mxu1 }
 0x1bb   :  { %v217_v45 = vadd.f32 %v317_v44, %v245_v43  ;;  %v211_v46 = vpop.f32.mrb[1].mxu1 }
 0x1bc   :  { %v212_v47 = vadd.f32 %v245_v43, %v211_v46 }
 0x1bd   :  { %v247_v48 = vmul.f32 -1.442695, %v217_v45 }
 0x1be   :  { %v246_v49 = vmul.f32 -1.442695, %v212_v47 }
 0x1bf   :  { %358 = vpow2.f32 %v247_v48 }
 0x1c0   :  { %360 = vpow2.f32 %v246_v49 }
 0x1c9   :  { %v359_v50 = vpop.eup %358 }
 0x1ca   :  { %v361_v51 = vpop.eup %360  ;;  %v228_v52 = vadd.f32 1.0, %v359_v50 }
 0x1cb   :  { %v227_v53 = vadd.f32 1.0, %v361_v51 }
 0x1cc   :  { %362 = vrcp.f32 %v228_v52 }
 0x1cd   :  { %364 = vrcp.f32 %v227_v53 }
 0x1d6   :  { %v363_v54 = vpop.eup %362 }
 0x1d7   :  { %v365_v55 = vpop.eup %364  ;;  %v234_v56 = vsel %vm220_vm2, %v363_v54, %v217_v45 }
 0x1d8   :  { %237 = vst.msk [vmem:[%s481_s5 + $0x8] sm:$0xff] %vm235_vm3, %v234_v56  ;;  %v233_v57 = vsel %vm220_vm2, %v365_v55, %v212_v47 }
 0x1d9   :  { %236 = vst.msk [vmem:[%s481_s5] sm:$0xff] %vm235_vm3, %v233_v57 }

</bundles_post_ra>
